<compile_context>
chip_gen: v7x
topology: tpu7x:2x2x1
jax: 0.10.0
libtpu: 0.0.40
codegen_flags: <defaults>
</compile_context>

<pallas_src>
import functools

import jax
import jax.numpy as jnp
from jax.experimental import pallas as pl
from jax.experimental.pallas import tpu as pltpu


def _round_up(a, m):
    return ((a + m - 1) // m) * m


def _cdiv(a, b):
    return -(-a // b)


def _decoder_kernel(n_layers, split_first, out_dim, pack, *refs):
    """One batch tile of the decoder MLP.

    refs (split_first): z, c, w0_z, w0_c, b0, w1, b1, ..., out
    refs (otherwise):   z,    w0,        b0, w1, b1, ..., out
    """
    out_ref = refs[-1]
    if split_first:
        z_ref, c_ref = refs[0], refs[1]
        p = refs[2:-1]
        h = (jnp.dot(z_ref[...], p[0][...], preferred_element_type=jnp.float32)
             + jnp.dot(c_ref[...], p[1][...], preferred_element_type=jnp.float32)
             + p[2][...])
        rest = p[3:]
    else:
        z_ref = refs[0]
        p = refs[1:-1]
        h = jnp.dot(z_ref[...], p[0][...],
                    preferred_element_type=jnp.float32) + p[1][...]
        rest = p[2:]

    if n_layers > 1:
        h = jnp.maximum(h, 0.0)                      # ReLU after layer 0

    for li in range(1, n_layers):
        w = rest[2 * (li - 1)][...]
        b = rest[2 * (li - 1) + 1][...]
        h = jnp.dot(h, w, preferred_element_type=jnp.float32) + b
        if li + 1 < n_layers:
            h = jnp.maximum(h, 0.0)                  # ReLU between hidden layers

    h = jnp.clip(h, 0.0, 1.0).astype(out_ref.dtype)  # torch.clamp(x, 0, 1)

    if pack > 1:
        # Lane-dense store: (TB, out_dim) -> (TB // pack, pack * out_dim = 128).
        tb = h.shape[0]
        h = h.reshape(tb // pack, pack * out_dim)
    out_ref[...] = h


def decoder_forward(z, params, c=None, *, conditional=False,
                    batch_tile=2048, lane_dense_out=True):
    """Pallas forward pass of the VAE Decoder.

    z: (B, latent_size) float32
    c: (B, context_size) float32 or None
    params: list of (W, b) with W: (in, out), b: (1, out)
    """
    n_layers = len(params)
    B, latent = z.shape
    out_dim = params[-1][0].shape[1]

    use_split = bool(conditional and c is not None)
    if conditional and c is None and params[0][0].shape[0] != latent:
        raise ValueError(
            "Decoder(conditional=True) called without context c, but layer 0 "
            f"expects {params[0][0].shape[0]} input features (z has {latent}).")
    context = c.shape[1] if use_split else 0
    in_total = latent + context if use_split else latent

    # ---- flatten parameters (split layer-0 weight -> no concat(z, c) in HBM) --
    flat_params = []
    w0, b0 = params[0]
    if use_split:
        flat_params += [w0[:latent, :], w0[latent:, :], b0]
    else:
        flat_params += [w0, b0]
    for (w, b) in params[1:]:
        flat_params += [w, b]

    # ---- lane-dense output packing factor ------------------------------------
    pack = 1
    if lane_dense_out and out_dim < 128 and 128 % out_dim == 0:
        pack = 128 // out_dim
    row_mult = 8 * pack               # batch-tile row granularity

    # ---- batch tile: large (step-overhead bound); >= 2 balanced grid steps
    #      whenever possible so "parallel" splits across v7x's two TensorCores.
    half = _round_up(_cdiv(B, 2), row_mult)
    TB = max(row_mult, min(_round_up(int(batch_tile), row_mult), half))
    grid = (_cdiv(B, TB),)
    # No wrapper-side jnp.pad: the ragged last block is handled by Pallas
    # (masked output writes; garbage tail rows are row-independent).

    def _run(pack_n):
        in_specs = [pl.BlockSpec((TB, latent), lambda i: (i, 0))]
        inputs = [z]
        if use_split:
            in_specs.append(pl.BlockSpec((TB, context), lambda i: (i, 0)))
            inputs.append(c)

        def const_spec(a):
            nd = a.ndim
            return pl.BlockSpec(a.shape, lambda i: (0,) * nd)
        # TODO(synk): pl.Buffered(1) / packing all params into one slab would
        # trim a few KiB of VMEM padding and a handful of startup DMAs (minor).
        in_specs += [const_spec(a) for a in flat_params]
        inputs = inputs + flat_params

        if pack_n > 1:
            slab_rows = _cdiv(B, pack_n)
            out_rows, out_cols = slab_rows, pack_n * out_dim      # cols == 128
            out_spec = pl.BlockSpec((TB // pack_n, out_cols), lambda i: (i, 0))
        else:
            out_rows, out_cols = B, out_dim
            out_spec = pl.BlockSpec((TB, out_dim), lambda i: (i, 0))
        out_shape = jax.ShapeDtypeStruct((out_rows, out_cols), jnp.float32)

        # ---- advisory cost estimate ----
        rows = grid[0] * TB
        flops = sum(2 * rows * w.shape[0] * w.shape[1] for (w, _) in params)
        param_bytes = sum(int(a.size) * a.dtype.itemsize for a in flat_params)
        bytes_accessed = param_bytes + 4 * B * in_total + 4 * out_rows * out_cols
        cost = pl.CostEstimate(flops=int(flops), transcendentals=0,
                               bytes_accessed=int(bytes_accessed))

        # ---- VMEM limit from the real (lane-padded, double-buffered) footprint
        lane = lambda n: _round_up(max(int(n), 1), 128)
        sub = lambda n: _round_up(max(int(n), 1), 8)
        param_vmem = 2 * sum(sub(a.shape[0]) * lane(a.shape[1]) * 4
                             for a in flat_params)
        act_in = 2 * TB * (lane(latent) + (lane(context) if use_split else 0)) * 4
        blk_out_rows = TB // pack_n if pack_n > 1 else TB
        act_out = 2 * blk_out_rows * lane(out_cols) * 4
        widest = max([lane(w.shape[1]) for (w, _) in params] + [lane(in_total)])
        h_vmem = 2 * 2 * TB * widest * 4          # a couple of live f32 h slabs
        vmem_needed = param_vmem + act_in + act_out + h_vmem
        vmem_limit = int(min(max(2 * vmem_needed, 8 << 20), 64 << 20))

        kernel = functools.partial(_decoder_kernel, n_layers, use_split,
                                   out_dim, pack_n)
        out = pl.pallas_call(
            kernel,
            out_shape=out_shape,
            grid=grid,
            in_specs=in_specs,
            out_specs=out_spec,
            compiler_params=pltpu.CompilerParams(
                dimension_semantics=("parallel",),
                vmem_limit_bytes=vmem_limit,
            ),
            cost_estimate=cost,
        )(*inputs)

        if pack_n > 1:
            out = out.reshape(-1, out_dim)[:B]
        return out

    if pack > 1:
        try:
            return _run(pack)
        except Exception:
            # Some Mosaic toolchains reject the sublane->lane packing reshape;
            # fall back to the correct (lane-sparse) narrow store.
            pass
    return _run(1)


def init_decoder_params(key, layer_sizes, latent_size, conditional, context_size):
    """Deterministic synthetic parameter init mirroring the torch __init__ shapes."""
    input_size = latent_size + context_size if conditional else latent_size
    dims = [input_size] + list(layer_sizes)
    params = []
    for in_size, out_size in zip(dims[:-1], dims[1:]):
        key, kw, kb = jax.random.split(key, 3)
        scale = 1.0 / jnp.sqrt(jnp.float32(in_size))
        w = jax.random.uniform(kw, (in_size, out_size), jnp.float32, -scale, scale)
        b = jax.random.uniform(kb, (1, out_size), jnp.float32, -scale, scale)
        params.append((w, b))
    return params


def _reference(z, params, c, conditional):
    h = jnp.concatenate([z, c], axis=-1) if (conditional and c is not None) else z
    for i, (w, b) in enumerate(params):
        h = h @ w + b
        if i + 1 < len(params):
            h = jnp.maximum(h, 0.0)
    return jnp.clip(h, 0.0, 1.0)


if __name__ == "__main__":
    key = jax.random.PRNGKey(0)

    # ---- test 1: small conditional decoder (single grid step) ----
    batch, latent_size, context_size = 8, 8, 4
    layer_sizes = [32, 32, 16]
    k1, k2, k3, key = jax.random.split(key, 4)
    z = jax.random.normal(k1, (batch, latent_size), jnp.float32)
    c = jax.random.normal(k2, (batch, context_size), jnp.float32)
    params = init_decoder_params(k3, layer_sizes, latent_size, True, context_size)

    out = jax.block_until_ready(decoder_forward(z, params, c, conditional=True))
    ref = _reference(z, params, c, True)
    assert out.shape == (batch, layer_sizes[-1])
    assert jnp.allclose(out, ref, atol=1e-5, rtol=1e-5)

    # ---- test 2: non-conditional, ragged batch (2 grid steps, no padding) ----
    batch2, latent2 = 300, 16
    layer_sizes2 = [64, 64, 16]
    k4, k5, key = jax.random.split(key, 3)
    z2 = jax.random.normal(k4, (batch2, latent2), jnp.float32)
    params2 = init_decoder_params(k5, layer_sizes2, latent2, False, 0)

    out2 = jax.block_until_ready(
        decoder_forward(z2, params2, None, conditional=False))
    ref2 = _reference(z2, params2, None, False)
    assert out2.shape == (batch2, layer_sizes2[-1])
    assert jnp.allclose(out2, ref2, atol=1e-5, rtol=1e-5)

    print("KERNEL_OK")
</pallas_src>

<mosaic_0001>
module attributes {stable_mosaic.version = 11 : i64} {
  func.func @_decoder_kernel(%arg0: i32, %arg1: memref<64x8xf32, #tpu.memory_space<vmem>>, %arg2: memref<64x4xf32, #tpu.memory_space<vmem>>, %arg3: memref<8x32xf32, #tpu.memory_space<vmem>>, %arg4: memref<4x32xf32, #tpu.memory_space<vmem>>, %arg5: memref<1x32xf32, #tpu.memory_space<vmem>>, %arg6: memref<32x32xf32, #tpu.memory_space<vmem>>, %arg7: memref<1x32xf32, #tpu.memory_space<vmem>>, %arg8: memref<32x16xf32, #tpu.memory_space<vmem>>, %arg9: memref<1x16xf32, #tpu.memory_space<vmem>>, %arg10: memref<8x128xf32, #tpu.memory_space<vmem>>) attributes {dimension_semantics = [#tpu.dimension_semantics<parallel>], iteration_bounds = array<i64: 1>, scalar_prefetch = 0 : i64, scratch_operands = 0 : i64, tpu.core_type = #tpu.core_type<tc>, window_params = [{transform_indices = @transform_0, window_bounds = array<i64: 64, 8>}, {transform_indices = @transform_1, window_bounds = array<i64: 64, 4>}, {pipeline_mode = #tpu.pipeline_mode<synchronous>, transform_indices = @transform_2, window_bounds = array<i64: 8, 32>}, {pipeline_mode = #tpu.pipeline_mode<synchronous>, transform_indices = @transform_3, window_bounds = array<i64: 4, 32>}, {pipeline_mode = #tpu.pipeline_mode<synchronous>, transform_indices = @transform_4, window_bounds = array<i64: 1, 32>}, {pipeline_mode = #tpu.pipeline_mode<synchronous>, transform_indices = @transform_5, window_bounds = array<i64: 32, 32>}, {pipeline_mode = #tpu.pipeline_mode<synchronous>, transform_indices = @transform_6, window_bounds = array<i64: 1, 32>}, {pipeline_mode = #tpu.pipeline_mode<synchronous>, transform_indices = @transform_7, window_bounds = array<i64: 32, 16>}, {pipeline_mode = #tpu.pipeline_mode<synchronous>, transform_indices = @transform_8, window_bounds = array<i64: 1, 16>}, {transform_indices = @transform_9, window_bounds = array<i64: 8, 128>}]} {
    %c0 = arith.constant 0 : index
    %c0_0 = arith.constant 0 : index
    %0 = vector.load %arg1[%c0, %c0_0] : memref<64x8xf32, #tpu.memory_space<vmem>>, vector<64x8xf32>
    %c0_1 = arith.constant 0 : index
    %c0_2 = arith.constant 0 : index
    %1 = vector.load %arg3[%c0_1, %c0_2] : memref<8x32xf32, #tpu.memory_space<vmem>>, vector<8x32xf32>
    %cst = arith.constant dense<0.000000e+00> : vector<64x32xf32>
    %2 = tpu.matmul %0, %1, %cst {dimension_numbers = #tpu.dot_dimension_numbers<[1], [0], [0], [1], [0, 0, 1, 1], [], []>} : vector<64x8xf32>, vector<8x32xf32>, vector<64x32xf32> -> vector<64x32xf32>
    %c0_3 = arith.constant 0 : index
    %c0_4 = arith.constant 0 : index
    %3 = vector.load %arg2[%c0_3, %c0_4] : memref<64x4xf32, #tpu.memory_space<vmem>>, vector<64x4xf32>
    %c0_5 = arith.constant 0 : index
    %c0_6 = arith.constant 0 : index
    %4 = vector.load %arg4[%c0_5, %c0_6] : memref<4x32xf32, #tpu.memory_space<vmem>>, vector<4x32xf32>
    %cst_7 = arith.constant dense<0.000000e+00> : vector<64x32xf32>
    %5 = tpu.matmul %3, %4, %cst_7 {dimension_numbers = #tpu.dot_dimension_numbers<[1], [0], [0], [1], [0, 0, 1, 1], [], []>} : vector<64x4xf32>, vector<4x32xf32>, vector<64x32xf32> -> vector<64x32xf32>
    %6 = arith.addf %2, %5 : vector<64x32xf32>
    %c0_8 = arith.constant 0 : index
    %c0_9 = arith.constant 0 : index
    %7 = vector.load %arg5[%c0_8, %c0_9] : memref<1x32xf32, #tpu.memory_space<vmem>>, vector<1x32xf32>
    %8 = vector.broadcast %7 : vector<1x32xf32> to vector<64x32xf32>
    %9 = arith.addf %6, %8 : vector<64x32xf32>
    %cst_10 = arith.constant 0.000000e+00 : f32
    %10 = vector.broadcast %cst_10 : f32 to vector<64x32xf32>
    %11 = arith.maximumf %9, %10 : vector<64x32xf32>
    %c0_11 = arith.constant 0 : index
    %c0_12 = arith.constant 0 : index
    %12 = vector.load %arg6[%c0_11, %c0_12] : memref<32x32xf32, #tpu.memory_space<vmem>>, vector<32x32xf32>
    %c0_13 = arith.constant 0 : index
    %c0_14 = arith.constant 0 : index
    %13 = vector.load %arg7[%c0_13, %c0_14] : memref<1x32xf32, #tpu.memory_space<vmem>>, vector<1x32xf32>
    %cst_15 = arith.constant dense<0.000000e+00> : vector<64x32xf32>
    %14 = tpu.matmul %11, %12, %cst_15 {dimension_numbers = #tpu.dot_dimension_numbers<[1], [0], [0], [1], [0, 0, 1, 1], [], []>} : vector<64x32xf32>, vector<32x32xf32>, vector<64x32xf32> -> vector<64x32xf32>
    %15 = vector.broadcast %13 : vector<1x32xf32> to vector<64x32xf32>
    %16 = arith.addf %14, %15 : vector<64x32xf32>
    %cst_16 = arith.constant 0.000000e+00 : f32
    %17 = vector.broadcast %cst_16 : f32 to vector<64x32xf32>
    %18 = arith.maximumf %16, %17 : vector<64x32xf32>
    %c0_17 = arith.constant 0 : index
    %c0_18 = arith.constant 0 : index
    %19 = vector.load %arg8[%c0_17, %c0_18] : memref<32x16xf32, #tpu.memory_space<vmem>>, vector<32x16xf32>
    %c0_19 = arith.constant 0 : index
    %c0_20 = arith.constant 0 : index
    %20 = vector.load %arg9[%c0_19, %c0_20] : memref<1x16xf32, #tpu.memory_space<vmem>>, vector<1x16xf32>
    %cst_21 = arith.constant dense<0.000000e+00> : vector<64x16xf32>
    %21 = tpu.matmul %18, %19, %cst_21 {dimension_numbers = #tpu.dot_dimension_numbers<[1], [0], [0], [1], [0, 0, 1, 1], [], []>} : vector<64x32xf32>, vector<32x16xf32>, vector<64x16xf32> -> vector<64x16xf32>
    %22 = vector.broadcast %20 : vector<1x16xf32> to vector<64x16xf32>
    %23 = arith.addf %21, %22 : vector<64x16xf32>
    %cst_22 = arith.constant 0.000000e+00 : f32
    %cst_23 = arith.constant 1.000000e+00 : f32
    %24 = vector.broadcast %cst_22 : f32 to vector<64x16xf32>
    %25 = arith.maximumf %24, %23 : vector<64x16xf32>
    %26 = vector.broadcast %cst_23 : f32 to vector<64x16xf32>
    %27 = arith.minimumf %26, %25 : vector<64x16xf32>
    %28 = vector.shape_cast %27 : vector<64x16xf32> to vector<8x128xf32>
    %c0_24 = arith.constant 0 : index
    %c0_25 = arith.constant 0 : index
    %29 = vector.load %arg10[%c0_24, %c0_25] : memref<8x128xf32, #tpu.memory_space<vmem>>, vector<8x128xf32>
    tpu.vector_store %arg10[%c0_24, %c0_25], %28 {strides = array<i32>} : memref<8x128xf32, #tpu.memory_space<vmem>>, vector<8x128xf32>,
    return
  }
  func.func @transform_0(%arg0: i32) -> (i32, i32) {
    %c0_i32 = arith.constant 0 : i32
    %c0_i32_0 = arith.constant 0 : i32
    return %arg0, %c0_i32 : i32, i32
  }
  func.func @transform_1(%arg0: i32) -> (i32, i32) {
    %c0_i32 = arith.constant 0 : i32
    %c0_i32_0 = arith.constant 0 : i32
    return %arg0, %c0_i32 : i32, i32
  }
  func.func @transform_2(%arg0: i32) -> (i32, i32) {
    %c0_i32 = arith.constant 0 : i32
    %c0_i32_0 = arith.constant 0 : i32
    %c0_i32_1 = arith.constant 0 : i32
    return %c0_i32, %c0_i32_0 : i32, i32
  }
  func.func @transform_3(%arg0: i32) -> (i32, i32) {
    %c0_i32 = arith.constant 0 : i32
    %c0_i32_0 = arith.constant 0 : i32
    %c0_i32_1 = arith.constant 0 : i32
    return %c0_i32, %c0_i32_0 : i32, i32
  }
  func.func @transform_4(%arg0: i32) -> (i32, i32) {
    %c0_i32 = arith.constant 0 : i32
    %c0_i32_0 = arith.constant 0 : i32
    %c0_i32_1 = arith.constant 0 : i32
    return %c0_i32, %c0_i32_0 : i32, i32
  }
  func.func @transform_5(%arg0: i32) -> (i32, i32) {
    %c0_i32 = arith.constant 0 : i32
    %c0_i32_0 = arith.constant 0 : i32
    %c0_i32_1 = arith.constant 0 : i32
    return %c0_i32, %c0_i32_0 : i32, i32
  }
  func.func @transform_6(%arg0: i32) -> (i32, i32) {
    %c0_i32 = arith.constant 0 : i32
    %c0_i32_0 = arith.constant 0 : i32
    %c0_i32_1 = arith.constant 0 : i32
    return %c0_i32, %c0_i32_0 : i32, i32
  }
  func.func @transform_7(%arg0: i32) -> (i32, i32) {
    %c0_i32 = arith.constant 0 : i32
    %c0_i32_0 = arith.constant 0 : i32
    %c0_i32_1 = arith.constant 0 : i32
    return %c0_i32, %c0_i32_0 : i32, i32
  }
  func.func @transform_8(%arg0: i32) -> (i32, i32) {
    %c0_i32 = arith.constant 0 : i32
    %c0_i32_0 = arith.constant 0 : i32
    %c0_i32_1 = arith.constant 0 : i32
    return %c0_i32, %c0_i32_0 : i32, i32
  }
  func.func @transform_9(%arg0: i32) -> (i32, i32) {
    %c0_i32 = arith.constant 0 : i32
    %c0_i32_0 = arith.constant 0 : i32
    return %arg0, %c0_i32 : i32, i32
  }
}

module attributes {stable_mosaic.version = 11 : i64} {
  func.func @_decoder_kernel(%arg0: i32, %arg1: memref<64x8xf32, #tpu.memory_space<vmem>>, %arg2: memref<64x4xf32, #tpu.memory_space<vmem>>, %arg3: memref<8x32xf32, #tpu.memory_space<vmem>>, %arg4: memref<4x32xf32, #tpu.memory_space<vmem>>, %arg5: memref<1x32xf32, #tpu.memory_space<vmem>>, %arg6: memref<32x32xf32, #tpu.memory_space<vmem>>, %arg7: memref<1x32xf32, #tpu.memory_space<vmem>>, %arg8: memref<32x16xf32, #tpu.memory_space<vmem>>, %arg9: memref<1x16xf32, #tpu.memory_space<vmem>>, %arg10: memref<64x16xf32, #tpu.memory_space<vmem>>) attributes {dimension_semantics = [#tpu.dimension_semantics<parallel>], iteration_bounds = array<i64: 1>, scalar_prefetch = 0 : i64, scratch_operands = 0 : i64, tpu.core_type = #tpu.core_type<tc>, window_params = [{transform_indices = @transform_0, window_bounds = array<i64: 64, 8>}, {transform_indices = @transform_1, window_bounds = array<i64: 64, 4>}, {pipeline_mode = #tpu.pipeline_mode<synchronous>, transform_indices = @transform_2, window_bounds = array<i64: 8, 32>}, {pipeline_mode = #tpu.pipeline_mode<synchronous>, transform_indices = @transform_3, window_bounds = array<i64: 4, 32>}, {pipeline_mode = #tpu.pipeline_mode<synchronous>, transform_indices = @transform_4, window_bounds = array<i64: 1, 32>}, {pipeline_mode = #tpu.pipeline_mode<synchronous>, transform_indices = @transform_5, window_bounds = array<i64: 32, 32>}, {pipeline_mode = #tpu.pipeline_mode<synchronous>, transform_indices = @transform_6, window_bounds = array<i64: 1, 32>}, {pipeline_mode = #tpu.pipeline_mode<synchronous>, transform_indices = @transform_7, window_bounds = array<i64: 32, 16>}, {pipeline_mode = #tpu.pipeline_mode<synchronous>, transform_indices = @transform_8, window_bounds = array<i64: 1, 16>}, {transform_indices = @transform_9, window_bounds = array<i64: 64, 16>}]} {
    %c0 = arith.constant 0 : index
    %c0_0 = arith.constant 0 : index
    %0 = vector.load %arg1[%c0, %c0_0] : memref<64x8xf32, #tpu.memory_space<vmem>>, vector<64x8xf32>
    %c0_1 = arith.constant 0 : index
    %c0_2 = arith.constant 0 : index
    %1 = vector.load %arg3[%c0_1, %c0_2] : memref<8x32xf32, #tpu.memory_space<vmem>>, vector<8x32xf32>
    %cst = arith.constant dense<0.000000e+00> : vector<64x32xf32>
    %2 = tpu.matmul %0, %1, %cst {dimension_numbers = #tpu.dot_dimension_numbers<[1], [0], [0], [1], [0, 0, 1, 1], [], []>} : vector<64x8xf32>, vector<8x32xf32>, vector<64x32xf32> -> vector<64x32xf32>
    %c0_3 = arith.constant 0 : index
    %c0_4 = arith.constant 0 : index
    %3 = vector.load %arg2[%c0_3, %c0_4] : memref<64x4xf32, #tpu.memory_space<vmem>>, vector<64x4xf32>
    %c0_5 = arith.constant 0 : index
    %c0_6 = arith.constant 0 : index
    %4 = vector.load %arg4[%c0_5, %c0_6] : memref<4x32xf32, #tpu.memory_space<vmem>>, vector<4x32xf32>
    %cst_7 = arith.constant dense<0.000000e+00> : vector<64x32xf32>
    %5 = tpu.matmul %3, %4, %cst_7 {dimension_numbers = #tpu.dot_dimension_numbers<[1], [0], [0], [1], [0, 0, 1, 1], [], []>} : vector<64x4xf32>, vector<4x32xf32>, vector<64x32xf32> -> vector<64x32xf32>
    %6 = arith.addf %2, %5 : vector<64x32xf32>
    %c0_8 = arith.constant 0 : index
    %c0_9 = arith.constant 0 : index
    %7 = vector.load %arg5[%c0_8, %c0_9] : memref<1x32xf32, #tpu.memory_space<vmem>>, vector<1x32xf32>
    %8 = vector.broadcast %7 : vector<1x32xf32> to vector<64x32xf32>
    %9 = arith.addf %6, %8 : vector<64x32xf32>
    %cst_10 = arith.constant 0.000000e+00 : f32
    %10 = vector.broadcast %cst_10 : f32 to vector<64x32xf32>
    %11 = arith.maximumf %9, %10 : vector<64x32xf32>
    %c0_11 = arith.constant 0 : index
    %c0_12 = arith.constant 0 : index
    %12 = vector.load %arg6[%c0_11, %c0_12] : memref<32x32xf32, #tpu.memory_space<vmem>>, vector<32x32xf32>
    %c0_13 = arith.constant 0 : index
    %c0_14 = arith.constant 0 : index
    %13 = vector.load %arg7[%c0_13, %c0_14] : memref<1x32xf32, #tpu.memory_space<vmem>>, vector<1x32xf32>
    %cst_15 = arith.constant dense<0.000000e+00> : vector<64x32xf32>
    %14 = tpu.matmul %11, %12, %cst_15 {dimension_numbers = #tpu.dot_dimension_numbers<[1], [0], [0], [1], [0, 0, 1, 1], [], []>} : vector<64x32xf32>, vector<32x32xf32>, vector<64x32xf32> -> vector<64x32xf32>
    %15 = vector.broadcast %13 : vector<1x32xf32> to vector<64x32xf32>
    %16 = arith.addf %14, %15 : vector<64x32xf32>
    %cst_16 = arith.constant 0.000000e+00 : f32
    %17 = vector.broadcast %cst_16 : f32 to vector<64x32xf32>
    %18 = arith.maximumf %16, %17 : vector<64x32xf32>
    %c0_17 = arith.constant 0 : index
    %c0_18 = arith.constant 0 : index
    %19 = vector.load %arg8[%c0_17, %c0_18] : memref<32x16xf32, #tpu.memory_space<vmem>>, vector<32x16xf32>
    %c0_19 = arith.constant 0 : index
    %c0_20 = arith.constant 0 : index
    %20 = vector.load %arg9[%c0_19, %c0_20] : memref<1x16xf32, #tpu.memory_space<vmem>>, vector<1x16xf32>
    %cst_21 = arith.constant dense<0.000000e+00> : vector<64x16xf32>
    %21 = tpu.matmul %18, %19, %cst_21 {dimension_numbers = #tpu.dot_dimension_numbers<[1], [0], [0], [1], [0, 0, 1, 1], [], []>} : vector<64x32xf32>, vector<32x16xf32>, vector<64x16xf32> -> vector<64x16xf32>
    %22 = vector.broadcast %20 : vector<1x16xf32> to vector<64x16xf32>
    %23 = arith.addf %21, %22 : vector<64x16xf32>
    %cst_22 = arith.constant 0.000000e+00 : f32
    %cst_23 = arith.constant 1.000000e+00 : f32
    %24 = vector.broadcast %cst_22 : f32 to vector<64x16xf32>
    %25 = arith.maximumf %24, %23 : vector<64x16xf32>
    %26 = vector.broadcast %cst_23 : f32 to vector<64x16xf32>
    %27 = arith.minimumf %26, %25 : vector<64x16xf32>
    %c0_24 = arith.constant 0 : index
    %c0_25 = arith.constant 0 : index
    %28 = vector.load %arg10[%c0_24, %c0_25] : memref<64x16xf32, #tpu.memory_space<vmem>>, vector<64x16xf32>
    tpu.vector_store %arg10[%c0_24, %c0_25], %27 {strides = array<i32>} : memref<64x16xf32, #tpu.memory_space<vmem>>, vector<64x16xf32>,
    return
  }
  func.func @transform_0(%arg0: i32) -> (i32, i32) {
    %c0_i32 = arith.constant 0 : i32
    %c0_i32_0 = arith.constant 0 : i32
    return %arg0, %c0_i32 : i32, i32
  }
  func.func @transform_1(%arg0: i32) -> (i32, i32) {
    %c0_i32 = arith.constant 0 : i32
    %c0_i32_0 = arith.constant 0 : i32
    return %arg0, %c0_i32 : i32, i32
  }
  func.func @transform_2(%arg0: i32) -> (i32, i32) {
    %c0_i32 = arith.constant 0 : i32
    %c0_i32_0 = arith.constant 0 : i32
    %c0_i32_1 = arith.constant 0 : i32
    return %c0_i32, %c0_i32_0 : i32, i32
  }
  func.func @transform_3(%arg0: i32) -> (i32, i32) {
    %c0_i32 = arith.constant 0 : i32
    %c0_i32_0 = arith.constant 0 : i32
    %c0_i32_1 = arith.constant 0 : i32
    return %c0_i32, %c0_i32_0 : i32, i32
  }
  func.func @transform_4(%arg0: i32) -> (i32, i32) {
    %c0_i32 = arith.constant 0 : i32
    %c0_i32_0 = arith.constant 0 : i32
    %c0_i32_1 = arith.constant 0 : i32
    return %c0_i32, %c0_i32_0 : i32, i32
  }
  func.func @transform_5(%arg0: i32) -> (i32, i32) {
    %c0_i32 = arith.constant 0 : i32
    %c0_i32_0 = arith.constant 0 : i32
    %c0_i32_1 = arith.constant 0 : i32
    return %c0_i32, %c0_i32_0 : i32, i32
  }
  func.func @transform_6(%arg0: i32) -> (i32, i32) {
    %c0_i32 = arith.constant 0 : i32
    %c0_i32_0 = arith.constant 0 : i32
    %c0_i32_1 = arith.constant 0 : i32
    return %c0_i32, %c0_i32_0 : i32, i32
  }
  func.func @transform_7(%arg0: i32) -> (i32, i32) {
    %c0_i32 = arith.constant 0 : i32
    %c0_i32_0 = arith.constant 0 : i32
    %c0_i32_1 = arith.constant 0 : i32
    return %c0_i32, %c0_i32_0 : i32, i32
  }
  func.func @transform_8(%arg0: i32) -> (i32, i32) {
    %c0_i32 = arith.constant 0 : i32
    %c0_i32_0 = arith.constant 0 : i32
    %c0_i32_1 = arith.constant 0 : i32
    return %c0_i32, %c0_i32_0 : i32, i32
  }
  func.func @transform_9(%arg0: i32) -> (i32, i32) {
    %c0_i32 = arith.constant 0 : i32
    %c0_i32_0 = arith.constant 0 : i32
    return %arg0, %c0_i32 : i32, i32
  }
}

</mosaic_0001>

<bundles_post_ra>
// kernel: tpu_custom_call.1
= control target key start
LH: loop header
LB: loop body
LE: loop exit
PB: predicated region body
PF: predicated region fallthrough
CT: control target
= control target key end

     0   :  { %14 = vsyncpa [#allocation3], 0  ;;  %vm76_vm0 = vcmask 1043456   ;;  %vm51_vm1 = vcmask 31744   ;;  %vm185_vm2 = vcmask 64512   ;;  %vm349_vm3 = vcmask 261120   ;;  %s1057_s0 = inlined_call_operand.vmem [shape: f32[8,8], index: 0, kind: input, shape index: {}]   ;;  %s1058_s1 = inlined_call_operand.vmem [shape: f32[8,4], index: 1, kind: input, shape index: {}]   ;;  %s1059_s2 = inlined_call_operand.vmem [shape: f32[8,32], index: 2, kind: input, shape index: {}]   ;;  %s1060_s3 = inlined_call_operand.vmem [shape: f32[4,32], index: 3, kind: input, shape index: {}]   ;;  %s1061_s4 = inlined_call_operand.vmem [shape: f32[1,32], index: 4, kind: input, shape index: {}]   ;;  %s1062_s5 = inlined_call_operand.vmem [shape: f32[32,32], index: 5, kind: input, shape index: {}]   ;;  %s1063_s6 = inlined_call_operand.vmem [shape: f32[1,32], index: 6, kind: input, shape index: {}]   ;;  %s1064_s7 = inlined_call_operand.vmem [shape: f32[32,16], index: 7, kind: input, shape index: {}]   ;;  %s1065_s8 = inlined_call_operand.vmem [shape: f32[1,16], index: 8, kind: input, shape index: {}]   ;;  %s1066_s9 = inlined_call_operand.hbm [shape: f32[8,16], index: 9, kind: output, shape index: {}]  }
   0x1   :  { %v50_v0 = vld [vmem:[%s1060_s3] sm:$0xf]  ;;  %v43_v2 = vld [vmem:[%s1058_s1 + $0x8] sm:$0xff]  ;;  %v44_v4 = vld [vmem:[%s1058_s1 + $0x10] sm:$0xff]  ;;  %vm643_vm4 = vcmask 130048  }
   0x2   :  { %v42_v1 = vld [vmem:[%s1058_s1] sm:$0xff]  ;;  %746 = vmatprep.subr.msk.mxu0 %vm76_vm0, %v50_v0  ;;  %v45_v5 = vld [vmem:[%s1058_s1 + $0x18] sm:$0xff]  ;;  %v339_v8 = vld [vmem:[%s1062_s5 + $0x8] sm:$0xff] }
   0x3   :  { %v41_v3 = vld [vmem:[%s1059_s2] sm:$0xff]  ;;  %747 = vmatpush3.msk.msra.mxu0 %vm76_vm0, %v50_v0  ;;  %748 = vmatprep.mubr.msk.f32.mxu0 %vm51_vm1, %v42_v1  ;;  %v47_v10 = vld [vmem:[%s1058_s1 + $0x28] sm:$0xff]  ;;  %v48_v11 = vld [vmem:[%s1058_s1 + $0x30] sm:$0xff] }
   0x4   :  { %749 = vmatmul.mubr.msk.f32.vlgmr.msra.gmra.mrb[0].mxu0 %vm51_vm1, %v43_v2  ;;  %760 = vmatprep.subr.mxu0 %v41_v3  ;;  %v46_v6 = vld [vmem:[%s1058_s1 + $0x20] sm:$0xff]  ;;  %v49_v12 = vld [vmem:[%s1058_s1 + $0x38] sm:$0xff]  ;;  %v34_v14 = vld [vmem:[%s1057_s0 + $0x8] sm:$0xff] }
   0x5   :  { %761 = vmatpush3.msra.mxu0 %v41_v3  ;;  %751 = vmatprep.mubr.msk.f32.mxu0 %vm51_vm1, %v44_v4  ;;  %v338_v7 = vld [vmem:[%s1062_s5] sm:$0xff]  ;;  %v35_v15 = vld [vmem:[%s1057_s0 + $0x10] sm:$0xff]  ;;  %v36_v16 = vld [vmem:[%s1057_s0 + $0x18] sm:$0xff] }
   0x6   :  { %v814_v9 = vpack.c.bf16 %v339_v8, %v338_v7  ;;  %v33_v13 = vld [vmem:[%s1057_s0] sm:$0xff]  ;;  %v38_v18 = vld [vmem:[%s1057_s0 + $0x28] sm:$0xff]  ;;  %v39_v19 = vld [vmem:[%s1057_s0 + $0x30] sm:$0xff] }
   0x7   :  { %v37_v17 = vld [vmem:[%s1057_s0 + $0x20] sm:$0xff]  ;;  %v40_v20 = vld [vmem:[%s1057_s0 + $0x38] sm:$0xff]  ;;  %v340_v21 = vld [vmem:[%s1062_s5 + $0x10] sm:$0xff] }
   0x8   :  { %752 = vmatmul.mubr.msk.f32.gmra.mrb[2].mxu0 %vm51_vm1, %v45_v5  ;;  %815 = vmatprep.subr.bf16.mxu1 %v814_v9  ;;  %v341_v22 = vld [vmem:[%s1062_s5 + $0x18] sm:$0xff]  ;;  %v487_v24 = vld [vmem:[%s1064_s7] sm:$0xff]  ;;  %v488_v25 = vld [vmem:[%s1064_s7 + $0x8] sm:$0xff] }
   0x9   :  { %754 = vmatprep.mubr.msk.f32.mxu0 %vm51_vm1, %v46_v6  ;;  %817 = vmatpush3.bf16.msra.mxu1 %v814_v9  ;;  %v818_v23 = vpack.c.bf16 %v341_v22, %v340_v21  ;;  %v822_v26 = vpack.c.bf16 %v488_v25, %v487_v24  ;;  %v685_v27 = vld [vmem:[%s1061_s4] ss:$0 sm:$0xff]  ;;  %v489_v32 = vld [vmem:[%s1064_s7 + $0x10] sm:$0xff]  ;;  %v490_v33 = vld [vmem:[%s1064_s7 + $0x18] sm:$0xff] }
   0xa   :  { %v826_v39 = vpack.c.bf16 %v490_v33, %v489_v32  ;;  %v686_v55 = vld [vmem:[%s1063_s6] ss:$0 sm:$0xff] }
   0xb   :  { %819 = vmatprep.subr.bf16.mxu1 %v818_v23 }
   0xc   :  { %755 = vmatmul.mubr.msk.f32.gmra.mrb[4].mxu0 %vm51_vm1, %v47_v10 }
   0xd   :  { %757 = vmatprep.mubr.msk.f32.mxu0 %vm51_vm1, %v48_v11  ;;  %821 = vmatpush3.bf16.msra.mxu1 %v818_v23 }
   0xe   :  { %823 = vmatprep.subr.bf16.mxu1 %v822_v26 }
  0x10   :  { %758 = vmatmul.mubr.msk.f32.gmra.mrb[6].mxu0 %vm51_vm1, %v49_v12 }
  0x11   :  { %762 = vmatprep.mubr.msk.f32.mxu0 %vm185_vm2, %v33_v13 }
  0x14   :  { %763 = vmatmul.mubr.msk.f32.vlgmr.msra.gmra.mrb[0].mxu0 %vm185_vm2, %v34_v14 }
  0x15   :  { %765 = vmatprep.mubr.msk.f32.mxu0 %vm185_vm2, %v35_v15 }
  0x18   :  { %766 = vmatmul.mubr.msk.f32.gmra.mrb[2].mxu0 %vm185_vm2, %v36_v16  ;;  %v695_v16 = vld [vmem:[%s1065_s8] ss:$0 sm:$0xff] }
  0x19   :  { %768 = vmatprep.mubr.msk.f32.mxu0 %vm185_vm2, %v37_v17 }
  0x1c   :  { %769 = vmatmul.mubr.msk.f32.gmra.mrb[4].mxu0 %vm185_vm2, %v38_v18 }
  0x1d   :  { %771 = vmatprep.mubr.msk.f32.mxu0 %vm185_vm2, %v39_v19 }
  0x20   :  { %772 = vmatmul.mubr.msk.f32.gmra.mrb[6].mxu0 %vm185_vm2, %v40_v20 }
  0xe7   :  { %v764_v28 = vpop.f32.mrb[0].mxu0 }
  0xe8   :  { %v323_v29 = vadd.f32 %v764_v28, %v685_v27  ;;  %v276_v30 = vpop.f32.mrb[1].mxu0 }
  0xe9   :  { %v322_v31 = vadd.f32 %v685_v27, %v276_v30 }
  0xea   :  { %v331_v36 = vmax.f32 %v323_v29, 0.0 }
  0xeb   :  { %v330_v34 = vmax.f32 %v322_v31, 0.0  ;;  %v767_v35 = vpop.f32.mrb[2].mxu0 }
  0xec   :  { %v325_v37 = vadd.f32 %v767_v35, %v685_v27  ;;  %v286_v38 = vpop.f32.mrb[3].mxu0 }
  0xed   :  { %v324_v40 = vadd.f32 %v685_v27, %v286_v38  ;;  %782 = vmatprep.mubr.msk.f32.mxu1 %vm349_vm3, %v330_v34 }
  0xee   :  { %783 = vmatmul.mubr.msk.f32.vlgmr.msra.gmra.mrb[0].mxu1 %vm349_vm3, %v331_v36  ;;  %v333_v43 = vmax.f32 %v325_v37, 0.0 }
  0xef   :  { %v332_v41 = vmax.f32 %v324_v40, 0.0  ;;  %v770_v42 = vpop.f32.mrb[4].mxu0  ;;  %825 = vmatpush3.bf16.msra.mxu1 %v822_v26 }
  0xf0   :  { %v327_v44 = vadd.f32 %v770_v42, %v685_v27  ;;  %v296_v45 = vpop.f32.mrb[5].mxu0  ;;  %827 = vmatprep.subr.bf16.mxu1 %v826_v39 }
  0xf1   :  { %v326_v46 = vadd.f32 %v685_v27, %v296_v45  ;;  %785 = vmatprep.mubr.msk.f32.mxu1 %vm349_vm3, %v332_v41 }
  0xf2   :  { %786 = vmatmul.mubr.msk.f32.gmra.mrb[2].mxu1 %vm349_vm3, %v333_v43  ;;  %v335_v49 = vmax.f32 %v327_v44, 0.0 }
  0xf3   :  { %v334_v47 = vmax.f32 %v326_v46, 0.0  ;;  %v773_v48 = vpop.f32.mrb[6].mxu0  ;;  %829 = vmatpush3.bf16.msra.mxu1 %v826_v39 }
  0xf4   :  { %v329_v50 = vadd.f32 %v773_v48, %v685_v27  ;;  %v306_v51 = vpop.f32.mrb[7].mxu0 }
  0xf5   :  { %v328_v52 = vadd.f32 %v685_v27, %v306_v51  ;;  %788 = vmatprep.mubr.msk.f32.mxu1 %vm349_vm3, %v334_v47 }
  0xf6   :  { %789 = vmatmul.mubr.msk.f32.gmra.mrb[4].mxu1 %vm349_vm3, %v335_v49  ;;  %v337_v54 = vmax.f32 %v329_v50, 0.0 }
  0xf7   :  { %v336_v53 = vmax.f32 %v328_v52, 0.0 }
  0xf9   :  { %791 = vmatprep.mubr.msk.f32.mxu1 %vm349_vm3, %v336_v53 }
  0xfa   :  { %792 = vmatmul.mubr.msk.f32.gmra.mrb[6].mxu1 %vm349_vm3, %v337_v54 }
 0x1c1   :  { %v784_v56 = vpop.f32.mrb[0].mxu1 }
 0x1c2   :  { %v446_v57 = vadd.f32 %v784_v56, %v686_v55  ;;  %v440_v58 = vpop.f32.mrb[1].mxu1 }
 0x1c3   :  { %v441_v59 = vadd.f32 %v686_v55, %v440_v58 }
 0x1c4   :  { %v480_v62 = vmax.f32 %v446_v57, 0.0 }
 0x1c5   :  { %v479_v60 = vmax.f32 %v441_v59, 0.0  ;;  %v787_v61 = vpop.f32.mrb[2].mxu1 }
 0x1c6   :  { %v456_v63 = vadd.f32 %v787_v61, %v686_v55  ;;  %v450_v0 = vpop.f32.mrb[3].mxu1 }
 0x1c7   :  { %v451_v1 = vadd.f32 %v686_v55, %v450_v0  ;;  %802 = vmatprep.mubr.msk.f32.mxu1 %vm349_vm3, %v479_v60 }
 0x1c8   :  { %803 = vmatmul.mubr.msk.f32.vlgmr.msra.gmra.mrb[8].mxu1 %vm349_vm3, %v480_v62  ;;  %v482_v4 = vmax.f32 %v456_v63, 0.0 }
 0x1c9   :  { %v481_v2 = vmax.f32 %v451_v1, 0.0  ;;  %v790_v3 = vpop.f32.mrb[4].mxu1 }
 0x1ca   :  { %v466_v5 = vadd.f32 %v790_v3, %v686_v55  ;;  %v460_v6 = vpop.f32.mrb[5].mxu1 }
 0x1cb   :  { %v461_v7 = vadd.f32 %v686_v55, %v460_v6  ;;  %805 = vmatprep.mubr.msk.f32.mxu1 %vm349_vm3, %v481_v2 }
 0x1cc   :  { %806 = vmatmul.mubr.msk.f32.gmra.mrb[10].mxu1 %vm349_vm3, %v482_v4  ;;  %v484_v10 = vmax.f32 %v466_v5, 0.0 }
 0x1cd   :  { %v483_v8 = vmax.f32 %v461_v7, 0.0  ;;  %v793_v9 = vpop.f32.mrb[6].mxu1 }
 0x1ce   :  { %v476_v11 = vadd.f32 %v793_v9, %v686_v55  ;;  %v470_v12 = vpop.f32.mrb[7].mxu1 }
 0x1cf   :  { %v471_v13 = vadd.f32 %v686_v55, %v470_v12  ;;  %808 = vmatprep.mubr.msk.f32.mxu1 %vm349_vm3, %v483_v8 }
 0x1d0   :  { %809 = vmatmul.mubr.msk.f32.gmra.mrb[12].mxu1 %vm349_vm3, %v484_v10  ;;  %v486_v15 = vmax.f32 %v476_v11, 0.0 }
 0x1d1   :  { %v485_v14 = vmax.f32 %v471_v13, 0.0 }
 0x1d3   :  { %811 = vmatprep.mubr.msk.f32.mxu1 %vm349_vm3, %v485_v14 }
 0x1d4   :  { %812 = vmatmul.mubr.msk.f32.gmra.mrb[14].mxu1 %vm349_vm3, %v486_v15 }
 0x29b   :  { %v804_v17 = vpop.f32.mrb[8].mxu1 }
 0x29c   :  { %v594_v18 = vadd.f32 %v804_v17, %v695_v16  ;;  %v588_v19 = vpop.f32.mrb[9].mxu1 }
 0x29d   :  { %v589_v20 = vadd.f32 %v695_v16, %v588_v19 }
 0x29e   :  { %v628_v21 = vmax.f32 %v594_v18, 0.0 }
 0x29f   :  { %v627_v22 = vmax.f32 %v589_v20, 0.0  ;;  %v807_v23 = vpop.f32.mrb[10].mxu1 }
 0x2a0   :  { %v636_v24 = vmin.f32 %v628_v21, 1.0  ;;  %v604_v25 = vadd.f32 %v807_v23, %v695_v16  ;;  %v598_v26 = vpop.f32.mrb[11].mxu1 }
 0x2a1   :  { %v635_v27 = vmin.f32 %v627_v22, 1.0  ;;  %v599_v28 = vadd.f32 %v695_v16, %v598_v26 }
 0x2a2   :  { %645 = vst.msk [vmem:[#allocation2 + $0x8] sm:$0xff] %vm643_vm4, %v636_v24  ;;  %v630_v29 = vmax.f32 %v604_v25, 0.0 }
 0x2a3   :  { %644 = vst.msk [vmem:[#allocation2] sm:$0xff] %vm643_vm4, %v635_v27  ;;  %v629_v30 = vmax.f32 %v599_v28, 0.0  ;;  %v810_v31 = vpop.f32.mrb[12].mxu1 }
 0x2a4   :  { %v638_v32 = vmin.f32 %v630_v29, 1.0  ;;  %v614_v33 = vadd.f32 %v810_v31, %v695_v16  ;;  %v608_v34 = vpop.f32.mrb[13].mxu1 }
 0x2a5   :  { %v637_v35 = vmin.f32 %v629_v30, 1.0  ;;  %v609_v36 = vadd.f32 %v695_v16, %v608_v34 }
 0x2a6   :  { %647 = vst.msk [vmem:[#allocation2 + $0x18] sm:$0xff] %vm643_vm4, %v638_v32  ;;  %v632_v37 = vmax.f32 %v614_v33, 0.0 }
 0x2a7   :  { %646 = vst.msk [vmem:[#allocation2 + $0x10] sm:$0xff] %vm643_vm4, %v637_v35  ;;  %v631_v38 = vmax.f32 %v609_v36, 0.0  ;;  %v813_v39 = vpop.f32.mrb[14].mxu1 }
 0x2a8   :  { %v640_v40 = vmin.f32 %v632_v37, 1.0  ;;  %v624_v41 = vadd.f32 %v813_v39, %v695_v16  ;;  %v618_v42 = vpop.f32.mrb[15].mxu1 }
 0x2a9   :  { %v639_v43 = vmin.f32 %v631_v38, 1.0  ;;  %v619_v44 = vadd.f32 %v695_v16, %v618_v42 }
 0x2aa   :  { %649 = vst.msk [vmem:[#allocation2 + $0x28] sm:$0xff] %vm643_vm4, %v640_v40  ;;  %v634_v45 = vmax.f32 %v624_v41, 0.0 }
 0x2ab   :  { %648 = vst.msk [vmem:[#allocation2 + $0x20] sm:$0xff] %vm643_vm4, %v639_v43  ;;  %v633_v46 = vmax.f32 %v619_v44, 0.0 }
 0x2ac   :  { %v642_v47 = vmin.f32 %v634_v45, 1.0 }
 0x2ad   :  { %v641_v48 = vmin.f32 %v633_v46, 1.0 }
 0x2ae   :  { %651 = vst.msk [vmem:[#allocation2 + $0x38] sm:$0xff] %vm643_vm4, %v642_v47 }
 0x2af   :  { %650 = vst.msk [vmem:[#allocation2 + $0x30] sm:$0xff] %vm643_vm4, %v641_v48 }
 0x2b0   :  { %656 = vsyncadd [#allocation3], 896  ;;  %s865_s8 = smov [#allocation2]  }
 0x2b1   :  { %s657_s15 = sshll.u32 %s865_s8, 4  ;;  %s658_s15 = int_to_ptr.vmem [resolvable:$true] %s657_s15 }
 0x2b2   :  { %s841_s1 = scalar_lea.vmem %s658_s15, 128  ;;  %s845_s16 = scalar_lea.vmem %s658_s15, 1024 }
 0x2b3   :  { %p842_p0 = scmp.ne.s32.totalorder %s658_s15, %s841_s1  ;;  %p846_p1 = scmp.lt.s32.totalorder %s658_s15, %s658_s15 }
 0x2b4   :  { %p847_p2 = scmp.lt.s32.totalorder %s845_s16, %s841_s1 }
 0x2b6   :  { %p848_p3 = por %p847_p2, %p846_p1 }
 0x2b8   :  { %p849_p4 = pnand %p848_p3, %p842_p0 }
 0x2ba   :  { %852 = shalt.err (!%p849_p4)
}
 0x2bb   :  { %s853_s3 = scalar_lea.hbm %s1066_s9, 128 }
 0x2bc   :  { %p854_p5 = scmp.ne.s32.totalorder %s1066_s9, %s853_s3  ;;  %p857_p6 = scmp.lt.u32.totalorder %s853_s3, %s1066_s9 }
 0x2be   :  { %p859_p7 = pnand %p857_p6, %p854_p5 }
 0x2c0   :  { %862 = shalt.err (!%p859_p7)
}
 0x2c1   :  { %s866_s22 = smov 128   ;;  %s867_s23 = smov 8  }
 0x2c2   :  { %663 = dma.vmem_to_hbm [thread:$0]  %s658_s15, 128, %s1066_s9, [#allocation3], %s866_s22, %s866_s22, %s867_s23  }
 0x2c3   :  { %863 = dma.done.wait [#allocation3], 1024  }
 0x2c4   :  { %864 = vsyncadd [#allocation3], 4294966272 }
 0x2c5   :  { %667 = vsyncpa [#allocation3], 1 }

</bundles_post_ra>
